<compile_context>
chip_gen: v6e
topology: v6e:2x2x1
jax: 0.10.0
libtpu: 0.0.40
codegen_flags: <defaults>
</compile_context>

<pallas_src>
import numpy as np

import jax
import jax.numpy as jnp
from jax.experimental import pallas as pl
from jax.experimental.pallas import tpu as pltpu


def _tonal_latents_kernel(chroma_ref, sel_ref, out_ref):
    # chroma_ref: (TM, A)   sel_ref: (A, WL)   out_ref: (TM, WL)
    chroma = chroma_ref[...]
    # chroma_or_tonnetz /= chroma_or_tonnetz.sum(1)[:, None]
    # exact reciprocal keeps the 1e-5 reference tolerance; the normalization is
    # on a (TM, A) tensor with tiny A, off the critical (writeback) path.
    row_sum = jnp.sum(chroma, axis=1, keepdims=True)
    chroma = chroma * pl.reciprocal(row_sum, approx=False)
    # einsum('Atwl,Atwl->twl', ...) == (TM, A) @ (A, W*L), f32 accumulation on MXU
    out_ref[...] = jnp.dot(
        chroma, sel_ref[...], preferred_element_type=jnp.float32
    ).astype(out_ref.dtype)


def _round_up(x, m):
    return ((x + m - 1) // m) * m


def _sublane_align(itemsize):
    # f32 -> 8, bf16 -> 16, int8 -> 32 (packed sublane rows).
    return max(8, 32 // max(1, int(itemsize)))


def build_tonal_latents(chroma_or_tonnetz, latent_selection, *,
                        tile_t=None, out_dtype=None, min_pallas_rows=64,
                        vmem_budget_bytes=40 << 20, core_parallel=False):
    """Returns the (T, W, L) latents buffer computed on-TPU.

    tile_t: optional cap on rows per grid step; by default TM is derived from
            `vmem_budget_bytes` as a function of W*L and the output dtype
            (double-buffered chroma + output tiles plus the resident sel),
            rounded to the sublane alignment and capped at 8192.
    out_dtype: output dtype. Pass jnp.bfloat16 to halve the store traffic of
               this writeback-bound kernel (f32 accumulation is kept; only the
               final cast loses precision, so the 1e-5 tolerance becomes ~1e-2).
    min_pallas_rows: below this T, skip Pallas (launch overhead dominates).
    vmem_budget_bytes: VMEM byte budget used to size TM (raise toward ~96 MiB
                       on v6e for very small W*L; keep <= ~48 MiB on v7x).
    core_parallel: map the T grid axis to pltpu.CORE_PARALLEL (v7x, 2 TCs).
    """
    T, A = chroma_or_tonnetz.shape
    N, W, L = latent_selection.shape
    if out_dtype is None:
        out_dtype = jnp.result_type(chroma_or_tonnetz.dtype, latent_selection.dtype)

    # glue: modulo gather of the latent selection
    # (== latent_selection[torch.arange(A) % len(latent_selection)])
    sel = latent_selection[jnp.arange(A) % N].reshape(A, W * L)

    if T < min_pallas_rows:
        # Tiny-T fallback: the whole job is a few hundred KFLOP; plain XLA
        # fusion is as fast or faster than a pallas_call launch.
        chroma_n = chroma_or_tonnetz / jnp.sum(
            chroma_or_tonnetz, axis=1, keepdims=True)
        out = jnp.dot(chroma_n, sel, preferred_element_type=jnp.float32)
        return out.astype(out_dtype).reshape(T, W, L)

    WL = W * L
    in_itemsize = jnp.dtype(chroma_or_tonnetz.dtype).itemsize
    sel_itemsize = jnp.dtype(sel.dtype).itemsize
    out_itemsize = jnp.dtype(out_dtype).itemsize

    # --- budget-driven TM ---------------------------------------------------
    align = max(_sublane_align(in_itemsize), _sublane_align(out_itemsize))
    # resident sel (count 2 buffers to be conservative about pipeline allocs)
    fixed_bytes = 2 * A * WL * sel_itemsize
    # double-buffered streamed chroma tile + double-buffered output tile
    per_row_bytes = 2 * A * in_itemsize + 2 * WL * out_itemsize
    usable = max(vmem_budget_bytes - fixed_bytes, per_row_bytes * align)
    tm = (usable // per_row_bytes) // align * align
    tm = max(align, min(int(tm), 8192))
    if tile_t is not None:
        tm = max(align, min(tm, _round_up(int(tile_t), align)))
    tm = min(tm, _round_up(T, align))
    TM = tm

    grid = (pl.cdiv(T, TM),)

    vmem_need = fixed_bytes + TM * per_row_bytes
    vmem_limit = int(min(max(vmem_need + (8 << 20), 32 << 20), 56 << 20))

    cost = pl.CostEstimate(
        flops=2 * T * A * WL,
        transcendentals=0,
        bytes_accessed=T * A * in_itemsize + A * WL * sel_itemsize
                       + T * WL * out_itemsize,
    )

    dim_sem = (pltpu.CORE_PARALLEL,) if core_parallel else ("parallel",)

    latents_flat = pl.pallas_call(
        _tonal_latents_kernel,
        out_shape=jax.ShapeDtypeStruct((T, WL), out_dtype),
        grid=grid,
        in_specs=[
            pl.BlockSpec((TM, A), lambda i: (i, 0)),    # streamed row tiles
            pl.BlockSpec((A, WL), lambda i: (0, 0)),    # resident across grid
        ],
        out_specs=pl.BlockSpec((TM, WL), lambda i: (i, 0)),
        compiler_params=pltpu.CompilerParams(
            dimension_semantics=dim_sem,
            vmem_limit_bytes=vmem_limit),
        cost_estimate=cost,
    )(chroma_or_tonnetz, sel)

    # (T, WL) -> (T, W, L) is a no-op bitcast (no padding, no slicing).
    return latents_flat.reshape(T, W, L)


class TonalLatents:
    """JAX/Pallas port of the PyTorch TonalLatents module."""

    def __init__(self, chroma_or_tonnetz, latent_selection, **kwargs):
        self.latents = build_tonal_latents(
            chroma_or_tonnetz, latent_selection, **kwargs)
        jax.block_until_ready(self.latents)
        # Per perf review: one host mirror up front instead of a jitted device
        # dispatch (~10-50 us) per audio frame; the precompute stays on-TPU.
        self._latents_host = np.asarray(self.latents)
        self.index = 0  # stateful frame cursor, same as the PyTorch module

    def forward(self):
        out = self._latents_host[self.index:self.index + 1]  # (1, W, L)
        self.index += 1
        return out

    __call__ = forward


if __name__ == "__main__":
    key = jax.random.PRNGKey(0)
    k1, k2, k3 = jax.random.split(key, 3)

    # Small but Pallas-exercising shapes: T=300 with tile_t=128 gives a 3-step
    # grid including a ragged (clipped-store) final tile; A=12 chroma bins;
    # (N, W, L) = (4, 8, 128) so W*L = 1024 is lane-dense.
    T, A = 300, 12
    N, W, L = 4, 8, 128

    # strictly positive so the row-normalization is well defined
    chroma = jax.random.uniform(k1, (T, A), jnp.float32, minval=0.1, maxval=1.0)
    latent_selection = jax.random.normal(k2, (N, W, L), jnp.float32)

    # pure-JAX reference of the __init__ einsum + forward indexing
    chroma_n = chroma / jnp.sum(chroma, axis=1, keepdims=True)
    sel_ref = latent_selection[jnp.arange(A) % N]                 # (A, W, L)
    ref = jnp.einsum("ta,awl->twl", chroma_n, sel_ref)            # (T, W, L)

    # 1) explicit small tile -> multi-step grid with a ragged tail block
    module = TonalLatents(chroma, latent_selection, tile_t=128)
    out0 = module()          # frame 0, shape (1, W, L)
    out1 = module()          # frame 1
    assert out0.shape == (1, W, L) and out1.shape == (1, W, L)
    assert jnp.allclose(out0, ref[0:1], atol=1e-5, rtol=1e-5)
    assert jnp.allclose(out1, ref[1:2], atol=1e-5, rtol=1e-5)
    assert jnp.allclose(module.latents, ref, atol=1e-5, rtol=1e-5)
    assert module.index == 2

    # 2) auto (budget-driven) tile + bf16 output (halved writeback traffic);
    #    only the final cast loses precision, hence the looser tolerance.
    module_bf = TonalLatents(chroma, latent_selection, out_dtype=jnp.bfloat16)
    out_bf = module_bf()
    assert out_bf.shape == (1, W, L)
    assert jnp.allclose(module_bf.latents.astype(jnp.float32), ref,
                        atol=2e-2, rtol=2e-2)

    # 3) tiny-T fallback path (bypasses Pallas by design).
    T_small = 8
    chroma_s = jax.random.uniform(k3, (T_small, A), jnp.float32,
                                  minval=0.1, maxval=1.0)
    module_s = TonalLatents(chroma_s, latent_selection)
    out_s = module_s()
    chroma_s_n = chroma_s / jnp.sum(chroma_s, axis=1, keepdims=True)
    ref_s = jnp.einsum("ta,awl->twl", chroma_s_n, sel_ref)
    assert out_s.shape == (1, W, L)
    assert jnp.allclose(out_s, ref_s[0:1], atol=1e-5, rtol=1e-5)

    print("KERNEL_OK")
</pallas_src>

<mosaic_0001>
module attributes {stable_mosaic.version = 11 : i64} {
  func.func @_tonal_latents_kernel(%arg0: i32, %arg1: memref<128x12xf32, #tpu.memory_space<vmem>>, %arg2: memref<12x1024xf32, #tpu.memory_space<vmem>>, %arg3: memref<128x1024xf32, #tpu.memory_space<vmem>>) attributes {dimension_semantics = [#tpu.dimension_semantics<parallel>], iteration_bounds = array<i64: 3>, scalar_prefetch = 0 : i64, scratch_operands = 0 : i64, tpu.core_type = #tpu.core_type<tc>, window_params = [{transform_indices = @transform_0, window_bounds = array<i64: 128, 12>}, {pipeline_mode = #tpu.pipeline_mode<synchronous>, transform_indices = @transform_1, window_bounds = array<i64: 12, 1024>}, {transform_indices = @transform_2, window_bounds = array<i64: 128, 1024>}]} {
    %c0 = arith.constant 0 : index
    %c0_0 = arith.constant 0 : index
    %0 = vector.load %arg1[%c0, %c0_0] : memref<128x12xf32, #tpu.memory_space<vmem>>, vector<128x12xf32>
    %cst = arith.constant dense<0.000000e+00> : vector<128xf32>
    %1 = vector.multi_reduction <add>, %0, %cst [1] : vector<128x12xf32> to vector<128xf32>
    %2 = vector.shape_cast %1 : vector<128xf32> to vector<128x1xf32>
    %3 = tpu.reciprocal %2 : vector<128x1xf32> -> vector<128x1xf32>
    %4 = vector.broadcast %3 : vector<128x1xf32> to vector<128x12xf32>
    %5 = arith.mulf %0, %4 : vector<128x12xf32>
    %c0_1 = arith.constant 0 : index
    %c0_2 = arith.constant 0 : index
    %6 = vector.load %arg2[%c0_1, %c0_2] : memref<12x1024xf32, #tpu.memory_space<vmem>>, vector<12x1024xf32>
    %cst_3 = arith.constant dense<0.000000e+00> : vector<128x1024xf32>
    %7 = tpu.matmul %5, %6, %cst_3 {dimension_numbers = #tpu.dot_dimension_numbers<[1], [0], [0], [1], [0, 0, 1, 1], [], []>} : vector<128x12xf32>, vector<12x1024xf32>, vector<128x1024xf32> -> vector<128x1024xf32>
    %c0_4 = arith.constant 0 : index
    %c0_5 = arith.constant 0 : index
    %8 = vector.load %arg3[%c0_4, %c0_5] : memref<128x1024xf32, #tpu.memory_space<vmem>>, vector<128x1024xf32>
    tpu.vector_store %arg3[%c0_4, %c0_5], %7 {strides = array<i32>} : memref<128x1024xf32, #tpu.memory_space<vmem>>, vector<128x1024xf32>,
    return
  }
  func.func @transform_0(%arg0: i32) -> (i32, i32) {
    %c0_i32 = arith.constant 0 : i32
    %c0_i32_0 = arith.constant 0 : i32
    return %arg0, %c0_i32 : i32, i32
  }
  func.func @transform_1(%arg0: i32) -> (i32, i32) {
    %c0_i32 = arith.constant 0 : i32
    %c0_i32_0 = arith.constant 0 : i32
    %c0_i32_1 = arith.constant 0 : i32
    return %c0_i32, %c0_i32_0 : i32, i32
  }
  func.func @transform_2(%arg0: i32) -> (i32, i32) {
    %c0_i32 = arith.constant 0 : i32
    %c0_i32_0 = arith.constant 0 : i32
    return %arg0, %c0_i32 : i32, i32
  }
}

</mosaic_0001>

<bundles_post_ra>
// kernel: tpu_custom_call.1
= control target key start
LH: loop header
LB: loop body
LE: loop exit
PB: predicated region body
PF: predicated region fallthrough
CT: control target
= control target key end

     0   :  { %7 = vsyncpa [#allocation3], 0  ;;  %s2133_s0 = inlined_call_operand.vmem [shape: f32[300,12], index: 0, kind: input, shape index: {}]   ;;  %s2134_s1 = inlined_call_operand.hbm [shape: f32[12,1024], index: 1, kind: input, shape index: {}]   ;;  %s2135_s2 = inlined_call_operand.hbm [shape: f32[300,1024], index: 2, kind: output, shape index: {}]  }
   0x1   :  { %8 = vsyncpa [#allocation4], 0 }
   0x2   :  { %10 = vsyncpa [#allocation4 + $0x1], 0  ;;  %s1534_s9 = smov 0   ;;  %s1536_s10 = smov 0  }
   0x3   :  { %s1538_s11 = smov 0   ;;  %s1540_s12 = smov 0  }
   0x4 LB: > { %s1555_s13 = sadd.s32 4294967295, %s1510_s12   ;;  %s1239_s14 = sadd.s32 4294967294, %s1510_s12   ;;  %s1510_s12 = sphi %s1540_s12, %s2143_s12   ;;  %s1506_s11 = sphi %s1538_s11, %s2142_s11   ;;  %s1502_s10 = sphi %s1536_s10, %s2141_s10   ;;  %s1498_s9 = sphi %s1534_s9, %s2140_s9  }
   0x5   : > { %s1559_s15 = sadd.s32 1, %s1510_s12   ;;  %s70_s16 = sadd.s32 1, %s1506_s11 }
   0x6   : > { %s67_s17 = ssub.s32 %s1510_s12, %s1559_s15  ;;  %p80_p0 = scmp.ne.s32.totalorder %s1506_s11, %s1502_s10 }
   0x7   : > { %p68_p1 = scmp.eq.s32.totalorder %s67_s17, 0  ;;  %p81_p2 = scmp.eq.s32.totalorder %s1555_s13, 2 }
   0x8   : > { %p86_p3 = scmp.ne.s32.totalorder %s1502_s10, %s1498_s9  ;;  %p87_p4 = scmp.eq.s32.totalorder %s1239_s14, 2 }
   0x9   : > { %s1570_s18 = scalar_select %p68_p1, %s1506_s11, %s70_s16  }
   0xa   : > { %p1572_p5 = por %p81_p2, %p80_p0  ;;  %p1576_p6 = por %p87_p4, %p86_p3 }
   0xb   : > { %p1240_p7 = scmp.ge.s32.totalorder %s1510_s12, 1  ;;  %p94_p8 = scmp.lt.s32.totalorder %s1510_s12, 4 }
   0xc   : > { %s2137_s20 = scalar_select %p1576_p6, 1, 0 }
   0xd   : > { %p1347_p9 = scmp.eq.s32.totalorder %s1555_s13, 0  ;;  %p1583_p10 = pnand %p1240_p7, %p94_p8 }
   0xe   : > { %s1512_s22 = smov [#allocation2]  }
   0xf   : > { %s106_s23 = sshll.u32 %s1512_s22, 4  ;;  %p1339_p11 = pneg %p1583_p10  ;;  %s107_s23 = int_to_ptr.vmem [resolvable:$true] %s106_s23 }
  0x10   : > { %s1431_s24 = scalar_lea.vmem %s107_s23, 2048  ;;  %p1439_p3 = scmp.lt.s32.totalorder %s107_s23, %s107_s23 }
  0x11   : > { %p1340_p12 = pnand %p1347_p9, %p1339_p11  ;;  %p1432_p0 = scmp.ne.s32.totalorder %s107_s23, %s1431_s24 }
  0x12   : > { %p1440_p4 = scmp.lt.s32.totalorder %s1431_s24, %s1431_s24 }
  0x13   : > { %p1422_p13 = pneg %p1340_p12 }
  0x14   : > { %p1441_p6 = por %p1440_p4, %p1439_p3 }
  0x15   : > { %p1434_p1 = pnand %p1432_p0, %p1422_p13 }
  0x17   : > { %p1435_p2 = pneg %p1434_p1 }
  0x19   : > { %p1442_p7 = pnand %p1441_p6, %p1435_p2 }
  0x1b   : > { %1445 = shalt.err (!%p1442_p7)
}
  0x1c   : > { %s1513_s25 = smov 1024   ;;  %s1514_s26 = smov 64  }
  0x1d   : > { %1342 = dma.hbm_to_vmem [thread:$0]  (!%p1340_p12), %s2134_s1, 2048, %s107_s23, [#allocation3], %s1513_s25, %s1513_s25, %s1514_s26  }
  0x1e   : > { %139 = sbr.rel (%p1583_p10) target bundleno = 546 (0x222), region = 28 }
  0x23   : > { %1489 = dma.done.wait (%p1347_p9), [#allocation3], 2048  }
  0x24   : > { %1491 = vsyncadd (%p1347_p9), [#allocation3], 4294965248  ;;  %s1601_s29 = sshll.u32 %s1555_s13, 4  ;;  %vm201_vm0 = vcmask 97280   ;;  %v291_v22 = vld [vmem:[#allocation2 + $0x48] sm:$0xf] }
  0x25   : > { %p170_p6 = scmp.lt.s32.totalorder %s1601_s29, 37  ;;  %vm346_vm1 = vcmask 1043456   ;;  %v293_v23 = vld [vmem:[#allocation2 + $0x58] sm:$0xf]  ;;  %v290_v24 = vld [vmem:[#allocation2 + $0x40] sm:$0xf] }
  0x26   : > { %1248 = vmatprep.subr.msk.mxu0 %vm346_vm1, %v291_v22  ;;  %1266 = vmatprep.subr.msk.mxu1 %vm346_vm1, %v293_v23  ;;  %v292_v25 = vld [vmem:[#allocation2 + $0x50] sm:$0xf]  ;;  %v283_v26 = vld [vmem:[#allocation2 + $0x8] sm:$0xff]  ;;  %v285_v27 = vld [vmem:[#allocation2 + $0x18] sm:$0xff]  ;;  %v1515_v38 = vmov 0.0   ;;  %s162_s7 = sand.u32 1, %s1502_s10  }
  0x27   : > { %s171_s30 = scalar_select %p170_p6, %s1601_s29, 37  ;;  %v282_v28 = vld [vmem:[#allocation2] sm:$0xff]  ;;  %v284_v29 = vld [vmem:[#allocation2 + $0x10] sm:$0xff]  ;;  %1249 = vmatpush1.msk.msra.mxu0 %vm346_vm1, %v290_v24  ;;  %1267 = vmatpush1.msk.msra.mxu1 %vm346_vm1, %v292_v25  ;;  %v295_v34 = vld [vmem:[#allocation2 + $0x68] sm:$0xf] }
  0x28   : > { %401 = vmatprep.subr.mxu0 %v283_v26  ;;  %562 = vmatprep.subr.mxu1 %v285_v27  ;;  %v297_v35 = vld [vmem:[#allocation2 + $0x78] sm:$0xf]  ;;  %v294_v51 = vld [vmem:[#allocation2 + $0x60] sm:$0xf]  ;;  %v296_v52 = vld [vmem:[#allocation2 + $0x70] sm:$0xf] }
  0x29   : > { %s1247_s3 = sshll.u32 %s171_s30, 3  ;;  %402 = vmatpush1.msra.mxu0 %v282_v28  ;;  %563 = vmatpush1.msra.mxu1 %v284_v29  ;;  %v287_v54 = vld [vmem:[#allocation2 + $0x28] sm:$0xff]  ;;  %v289_v55 = vld [vmem:[#allocation2 + $0x38] sm:$0xff]  ;;  %v286_v59 = vld [vmem:[#allocation2 + $0x20] sm:$0xff]  ;;  %s1245_s8 = sshll.u32 %s162_s7, 10 }
  0x2a   : > { %s1608_s6 = scalar_lea.vmem %s2133_s0, %s1247_s3  ;;  %435 = vmatprep.mubr.f32.mxu0 %v1515_v38  ;;  %596 = vmatprep.mubr.f32.mxu1 %v1515_v38  ;;  %v288_v60 = vld [vmem:[#allocation2 + $0x30] sm:$0xff]  ;;  %s1941_s14 = scalar_lea.vmem [#allocation5], %s1245_s8 }
  0x2b   : > { %v1611_v0 = vld [vmem:[%s1608_s6] sm:$0xff]  ;;  %v1614_v1 = vld [vmem:[%s1608_s6 + $0x8] sm:$0xff]  ;;  %v1617_v2 = vld [vmem:[%s1608_s6 + $0x10] sm:$0xff]  ;;  %1284 = vmatprep.subr.msk.mxu0 %vm346_vm1, %v295_v34  ;;  %1302 = vmatprep.subr.msk.mxu1 %vm346_vm1, %v297_v35  ;;  %s2073_s16 = scalar_lea.sflag [#allocation4], %s162_s7  ;;  %s1152_s17 = ssub.s32 (%p1572_p5), 38, %s1601_s29 }
  0x2c   : > { %v202_v3 = vsel %vm201_vm0, %v1611_v0, 0.0  ;;  %v208_v4 = vsel %vm201_vm0, %v1617_v2, 0.0  ;;  %v1624_v5 = vld [vmem:[%s1608_s6 + $0x18] sm:$0xff]  ;;  %v205_v6 = vsel %vm201_vm0, %v1614_v1, 0.0  ;;  %v1631_v8 = vld [vmem:[%s1608_s6 + $0x20] sm:$0xff]  ;;  %v1634_v9 = vld [vmem:[%s1608_s6 + $0x28] sm:$0xff] }
  0x2d   : > { %203 = vadd.xlane.f32.xlu0 %v202_v3  ;;  %209 = vadd.xlane.f32.xlu1 %v208_v4  ;;  %v211_v7 = vsel %vm201_vm0, %v1624_v5, 0.0  ;;  %v214_v10 = vsel %vm201_vm0, %v1631_v8, 0.0  ;;  %v217_v11 = vsel %vm201_vm0, %v1634_v9, 0.0  ;;  %v1641_v12 = vld [vmem:[%s1608_s6 + $0x30] sm:$0xff]  ;;  %v1644_v13 = vld [vmem:[%s1608_s6 + $0x38] sm:$0xff]  ;;  %v1651_v16 = vld [vmem:[%s1608_s6 + $0x40] sm:$0xff] }
  0x2e   : > { %v220_v14 = vsel %vm201_vm0, %v1641_v12, 0.0  ;;  %v223_v15 = vsel %vm201_vm0, %v1644_v13, 0.0  ;;  %v1654_v17 = vld [vmem:[%s1608_s6 + $0x48] sm:$0xff]  ;;  %v226_v18 = vsel %vm201_vm0, %v1651_v16, 0.0  ;;  %v1661_v20 = vld [vmem:[%s1608_s6 + $0x50] sm:$0xff]  ;;  %v1664_v21 = vld [vmem:[%s1608_s6 + $0x58] sm:$0xff] }
  0x2f   : > { %v229_v19 = vsel %vm201_vm0, %v1654_v17, 0.0  ;;  %v232_v30 = vsel %vm201_vm0, %v1661_v20, 0.0  ;;  %v235_v31 = vsel %vm201_vm0, %v1664_v21, 0.0  ;;  %v1675_v32 = vld [vmem:[%s1608_s6 + $0x60] sm:$0xff]  ;;  %v1678_v33 = vld [vmem:[%s1608_s6 + $0x68] sm:$0xff]  ;;  %v1687_v39 = vld [vmem:[%s1608_s6 + $0x70] sm:$0xff] }
  0x30   : > { %v238_v36 = vsel %vm201_vm0, %v1675_v32, 0.0  ;;  %v241_v37 = vsel %vm201_vm0, %v1678_v33, 0.0  ;;  %v1690_v40 = vld [vmem:[%s1608_s6 + $0x78] sm:$0xff]  ;;  %v244_v41 = vsel %vm201_vm0, %v1687_v39, 0.0  ;;  %p1153_p8 = scmp.lt.s32.totalorder (%p1572_p5), %s1152_s17, 16 }
  0x31   : > { %206 = vadd.xlane.f32.xlu0 %v205_v6  ;;  %212 = vadd.xlane.f32.xlu1 %v211_v7  ;;  %v247_v42 = vsel %vm201_vm0, %v1690_v40, 0.0 }
  0x35   : > { %215 = vadd.xlane.f32.xlu0 %v214_v10  ;;  %218 = vadd.xlane.f32.xlu1 %v217_v11 }
  0x39   : > { %221 = vadd.xlane.f32.xlu0 %v220_v14  ;;  %224 = vadd.xlane.f32.xlu1 %v223_v15 }
  0x3d   : > { %227 = vadd.xlane.f32.xlu0 %v226_v18  ;;  %230 = vadd.xlane.f32.xlu1 %v229_v19 }
  0x41   : > { %233 = vadd.xlane.f32.xlu0 %v232_v30  ;;  %236 = vadd.xlane.f32.xlu1 %v235_v31 }
  0x45   : > { %239 = vadd.xlane.f32.xlu0 %v238_v36  ;;  %242 = vadd.xlane.f32.xlu1 %v241_v37 }
  0x49   : > { %245 = vadd.xlane.f32.xlu0 %v244_v41  ;;  %248 = vadd.xlane.f32.xlu1 %v247_v42 }
  0xb6   : > { %v204_v43 = vpop.xlane.xlu0 %203  ;;  %v210_v44 = vpop.xlane.xlu1 %209 }
  0xb7   : > { %1388 = vrcp.f32 %v204_v43 }
  0xb8   : > { %1390 = vrcp.f32 %v210_v44 }
  0xba   : > { %v207_v45 = vpop.xlane.xlu0 %206  ;;  %v213_v46 = vpop.xlane.xlu1 %212 }
  0xbb   : > { %1392 = vrcp.f32 %v207_v45 }
  0xbc   : > { %1394 = vrcp.f32 %v213_v46 }
  0xbe   : > { %v216_v47 = vpop.xlane.xlu0 %215  ;;  %v219_v49 = vpop.xlane.xlu1 %218 }
  0xbf   : > { %1396 = vrcp.f32 %v216_v47 }
  0xc0   : > { %1398 = vrcp.f32 %v219_v49 }
  0xc2   : > { %v222_v57 = vpop.xlane.xlu0 %221  ;;  %v225_v63 = vpop.xlane.xlu1 %224 }
  0xc3   : > { %1400 = vrcp.f32 %v222_v57 }
  0xc4   : > { %v1389_v48 = vpop.eup %1388  ;;  %1402 = vrcp.f32 %v225_v63 }
  0xc5   : > { %v1699_v50 = vmul.f32 %v1389_v48, %v1611_v0  ;;  %v1391_v53 = vpop.eup %1390 }
  0xc6   : > { %v1717_v61 = vmul.f32 %v1391_v53, %v1617_v2  ;;  %v228_v2 = vpop.xlane.xlu0 %227 }
  0xc7   : > { %1250 = vmatmul.mubr.msk.f32.vlgmr.msra.gmra.mxu0 %vm201_vm0, %v1699_v50  ;;  %1268 = vmatmul.mubr.msk.f32.vlgmr.msra.gmra.mxu1 %vm201_vm0, %v1699_v50  ;;  %1404 = vrcp.f32 %v228_v2 }
  0xc8   : > { %v1393_v56 = vpop.eup %1392  ;;  %1285 = vmatpush1.msk.msra.mxu0 %vm346_vm1, %v294_v51  ;;  %1303 = vmatpush1.msk.msra.mxu1 %vm346_vm1, %v296_v52 }
  0xc9   : > { %441 = vmatprep.mubr.f32.mxu0 %v1515_v38  ;;  %602 = vmatprep.mubr.f32.mxu1 %v1515_v38  ;;  %v1710_v58 = vmul.f32 %v1393_v56, %v1614_v1  ;;  %v1395_v62 = vpop.eup %1394 }
  0xca   : > { %723 = vmatprep.subr.mxu0 %v287_v54  ;;  %884 = vmatprep.subr.mxu1 %v289_v55  ;;  %v1726_v0 = vmul.f32 %v1395_v62, %v1624_v5  ;;  %v231_v5 = vpop.xlane.xlu1 %230 }
  0xcb   : > { %1251 = vmatmul.mubr.msk.f32.gmra.mxu0 %vm201_vm0, %v1710_v58  ;;  %1269 = vmatmul.mubr.msk.f32.gmra.mxu1 %vm201_vm0, %v1710_v58  ;;  %1406 = vrcp.f32 %v231_v5 }
  0xcc   : > { %447 = vmatprep.mubr.f32.mxu0 %v1515_v38  ;;  %608 = vmatprep.mubr.f32.mxu1 %v1515_v38  ;;  %v1397_v1 = vpop.eup %1396 }
  0xcd   : > { %724 = vmatpush1.msra.mxu0 %v286_v59  ;;  %885 = vmatpush1.msra.mxu1 %v288_v60  ;;  %v1735_v3 = vmul.f32 %v1397_v1, %v1631_v8  ;;  %v1399_v4 = vpop.eup %1398  ;;  %v234_v8 = vpop.xlane.xlu0 %233 }
  0xce   : > { %v1744_v6 = vmul.f32 %v1399_v4, %v1634_v9  ;;  %1408 = vrcp.f32 %v234_v8  ;;  %v237_v9 = vpop.xlane.xlu1 %236 }
  0xcf   : > { %1252 = vmatmul.mubr.msk.f32.gmra.mxu0 %vm201_vm0, %v1717_v61  ;;  %1270 = vmatmul.mubr.msk.f32.gmra.mxu1 %vm201_vm0, %v1717_v61  ;;  %1410 = vrcp.f32 %v237_v9 }
  0xd0   : > { %453 = vmatprep.mubr.f32.mxu0 %v1515_v38  ;;  %614 = vmatprep.mubr.f32.mxu1 %v1515_v38  ;;  %v1401_v7 = vpop.eup %1400 }
  0xd1   : > { %v1753_v10 = vmul.f32 %v1401_v7, %v1641_v12  ;;  %v1403_v11 = vpop.eup %1402  ;;  %v240_v12 = vpop.xlane.xlu0 %239 }
  0xd2   : > { %v1762_v14 = vmul.f32 %v1403_v11, %v1644_v13  ;;  %1412 = vrcp.f32 %v240_v12  ;;  %v243_v13 = vpop.xlane.xlu1 %242 }
  0xd3   : > { %1253 = vmatmul.mubr.msk.f32.gmra.mxu0 %vm201_vm0, %v1726_v0  ;;  %1271 = vmatmul.mubr.msk.f32.gmra.mxu1 %vm201_vm0, %v1726_v0  ;;  %1414 = vrcp.f32 %v243_v13 }
  0xd4   : > { %459 = vmatprep.mubr.f32.mxu0 %v1515_v38  ;;  %620 = vmatprep.mubr.f32.mxu1 %v1515_v38  ;;  %v1405_v15 = vpop.eup %1404 }
  0xd5   : > { %v1771_v18 = vmul.f32 %v1405_v15, %v1651_v16  ;;  %v246_v16 = vpop.xlane.xlu0 %245 }
  0xd6   : > { %1416 = vrcp.f32 %v246_v16 }
  0xd7   : > { %1254 = vmatmul.mubr.msk.f32.gmra.mxu0 %vm201_vm0, %v1735_v3  ;;  %1272 = vmatmul.mubr.msk.f32.gmra.mxu1 %vm201_vm0, %v1735_v3 }
  0xd8   : > { %465 = vmatprep.mubr.f32.mxu0 %v1515_v38  ;;  %626 = vmatprep.mubr.f32.mxu1 %v1515_v38  ;;  %v1407_v19 = vpop.eup %1406 }
  0xd9   : > { %v1780_v22 = vmul.f32 %v1407_v19, %v1654_v17  ;;  %v249_v17 = vpop.xlane.xlu1 %248 }
  0xda   : > { %1418 = vrcp.f32 %v249_v17 }
  0xdb   : > { %1255 = vmatmul.mubr.msk.f32.gmra.mxu0 %vm201_vm0, %v1744_v6  ;;  %1273 = vmatmul.mubr.msk.f32.gmra.mxu1 %vm201_vm0, %v1744_v6  ;;  %v1409_v23 = vpop.eup %1408 }
  0xdc   : > { %471 = vmatprep.mubr.f32.mxu0 %v1515_v38  ;;  %632 = vmatprep.mubr.f32.mxu1 %v1515_v38  ;;  %v1789_v24 = vmul.f32 %v1409_v23, %v1661_v20  ;;  %v1411_v25 = vpop.eup %1410 }
  0xdd   : > { %v1798_v26 = vmul.f32 %v1411_v25, %v1664_v21 }
  0xdf   : > { %1256 = vmatmul.mubr.msk.f32.gmra.mxu0 %vm201_vm0, %v1753_v10  ;;  %1274 = vmatmul.mubr.msk.f32.gmra.mxu1 %vm201_vm0, %v1753_v10  ;;  %v1413_v27 = vpop.eup %1412 }
  0xe0   : > { %477 = vmatprep.mubr.f32.mxu0 %v1515_v38  ;;  %638 = vmatprep.mubr.f32.mxu1 %v1515_v38  ;;  %v1807_v20 = vmul.f32 %v1413_v27, %v1675_v32  ;;  %v1415_v28 = vpop.eup %1414 }
  0xe1   : > { %v1816_v21 = vmul.f32 %v1415_v28, %v1678_v33 }
  0xe3   : > { %1257 = vmatmul.mubr.msk.f32.gmra.mxu0 %vm201_vm0, %v1762_v14  ;;  %1275 = vmatmul.mubr.msk.f32.gmra.mxu1 %vm201_vm0, %v1762_v14  ;;  %v1417_v29 = vpop.eup %1416 }
  0xe4   : > { %483 = vmatprep.mubr.f32.mxu0 %v1515_v38  ;;  %644 = vmatprep.mubr.f32.mxu1 %v1515_v38  ;;  %v1825_v30 = vmul.f32 %v1417_v29, %v1687_v39 }
  0xe7   : > { %1258 = vmatmul.mubr.msk.f32.gmra.mxu0 %vm201_vm0, %v1771_v18  ;;  %1276 = vmatmul.mubr.msk.f32.gmra.mxu1 %vm201_vm0, %v1771_v18  ;;  %v1419_v31 = vpop.eup %1418 }
  0xe8   : > { %489 = vmatprep.mubr.f32.mxu0 %v1515_v38  ;;  %650 = vmatprep.mubr.f32.mxu1 %v1515_v38  ;;  %v1834_v32 = vmul.f32 %v1419_v31, %v1690_v40 }
  0xeb   : > { %1259 = vmatmul.mubr.msk.f32.gmra.mxu0 %vm201_vm0, %v1780_v22  ;;  %1277 = vmatmul.mubr.msk.f32.gmra.mxu1 %vm201_vm0, %v1780_v22 }
  0xec   : > { %495 = vmatprep.mubr.f32.mxu0 %v1515_v38  ;;  %656 = vmatprep.mubr.f32.mxu1 %v1515_v38 }
  0xef   : > { %1260 = vmatmul.mubr.msk.f32.gmra.mxu0 %vm201_vm0, %v1789_v24  ;;  %1278 = vmatmul.mubr.msk.f32.gmra.mxu1 %vm201_vm0, %v1789_v24 }
  0xf0   : > { %501 = vmatprep.mubr.f32.mxu0 %v1515_v38  ;;  %662 = vmatprep.mubr.f32.mxu1 %v1515_v38 }
  0xf3   : > { %1261 = vmatmul.mubr.msk.f32.gmra.mxu0 %vm201_vm0, %v1798_v26  ;;  %1279 = vmatmul.mubr.msk.f32.gmra.mxu1 %vm201_vm0, %v1798_v26 }
  0xf4   : > { %507 = vmatprep.mubr.f32.mxu0 %v1515_v38  ;;  %668 = vmatprep.mubr.f32.mxu1 %v1515_v38 }
  0xf7   : > { %1262 = vmatmul.mubr.msk.f32.gmra.mxu0 %vm201_vm0, %v1807_v20  ;;  %1280 = vmatmul.mubr.msk.f32.gmra.mxu1 %vm201_vm0, %v1807_v20 }
  0xf8   : > { %513 = vmatprep.mubr.f32.mxu0 %v1515_v38  ;;  %674 = vmatprep.mubr.f32.mxu1 %v1515_v38 }
  0xfb   : > { %1263 = vmatmul.mubr.msk.f32.gmra.mxu0 %vm201_vm0, %v1816_v21  ;;  %1281 = vmatmul.mubr.msk.f32.gmra.mxu1 %vm201_vm0, %v1816_v21 }
  0xfc   : > { %519 = vmatprep.mubr.f32.mxu0 %v1515_v38  ;;  %680 = vmatprep.mubr.f32.mxu1 %v1515_v38 }
  0xff   : > { %1264 = vmatmul.mubr.msk.f32.gmra.mxu0 %vm201_vm0, %v1825_v30  ;;  %1282 = vmatmul.mubr.msk.f32.gmra.mxu1 %vm201_vm0, %v1825_v30 }
 0x100   : > { %525 = vmatprep.mubr.f32.mxu0 %v1515_v38  ;;  %686 = vmatprep.mubr.f32.mxu1 %v1515_v38 }
 0x103   : > { %1265 = vmatmul.mubr.msk.f32.gmra.mxu0 %vm201_vm0, %v1834_v32  ;;  %1283 = vmatmul.mubr.msk.f32.gmra.mxu1 %vm201_vm0, %v1834_v32 }
 0x104   : > { %757 = vmatprep.mubr.f32.mxu0 %v1515_v38  ;;  %918 = vmatprep.mubr.f32.mxu1 %v1515_v38 }
 0x107   : > { %1286 = vmatmul.mubr.msk.f32.vlgmr.msra.gmra.mxu0 %vm201_vm0, %v1699_v50  ;;  %1304 = vmatmul.mubr.msk.f32.vlgmr.msra.gmra.mxu1 %vm201_vm0, %v1699_v50 }
 0x108   : > { %763 = vmatprep.mubr.f32.mxu0 %v1515_v38  ;;  %924 = vmatprep.mubr.f32.mxu1 %v1515_v38 }
 0x10b   : > { %1287 = vmatmul.mubr.msk.f32.gmra.mxu0 %vm201_vm0, %v1710_v58  ;;  %1305 = vmatmul.mubr.msk.f32.gmra.mxu1 %vm201_vm0, %v1710_v58 }
 0x10c   : > { %769 = vmatprep.mubr.f32.mxu0 %v1515_v38  ;;  %930 = vmatprep.mubr.f32.mxu1 %v1515_v38 }
 0x10f   : > { %1288 = vmatmul.mubr.msk.f32.gmra.mxu0 %vm201_vm0, %v1717_v61  ;;  %1306 = vmatmul.mubr.msk.f32.gmra.mxu1 %vm201_vm0, %v1717_v61 }
 0x110   : > { %775 = vmatprep.mubr.f32.mxu0 %v1515_v38  ;;  %936 = vmatprep.mubr.f32.mxu1 %v1515_v38 }
 0x113   : > { %1289 = vmatmul.mubr.msk.f32.gmra.mxu0 %vm201_vm0, %v1726_v0  ;;  %1307 = vmatmul.mubr.msk.f32.gmra.mxu1 %vm201_vm0, %v1726_v0 }
 0x114   : > { %781 = vmatprep.mubr.f32.mxu0 %v1515_v38  ;;  %942 = vmatprep.mubr.f32.mxu1 %v1515_v38 }
 0x117   : > { %1290 = vmatmul.mubr.msk.f32.gmra.mxu0 %vm201_vm0, %v1735_v3  ;;  %1308 = vmatmul.mubr.msk.f32.gmra.mxu1 %vm201_vm0, %v1735_v3 }
 0x118   : > { %787 = vmatprep.mubr.f32.mxu0 %v1515_v38  ;;  %948 = vmatprep.mubr.f32.mxu1 %v1515_v38 }
 0x11b   : > { %1291 = vmatmul.mubr.msk.f32.gmra.mxu0 %vm201_vm0, %v1744_v6  ;;  %1309 = vmatmul.mubr.msk.f32.gmra.mxu1 %vm201_vm0, %v1744_v6 }
 0x11c   : > { %793 = vmatprep.mubr.f32.mxu0 %v1515_v38  ;;  %954 = vmatprep.mubr.f32.mxu1 %v1515_v38 }
 0x11f   : > { %1292 = vmatmul.mubr.msk.f32.gmra.mxu0 %vm201_vm0, %v1753_v10  ;;  %1310 = vmatmul.mubr.msk.f32.gmra.mxu1 %vm201_vm0, %v1753_v10 }
 0x120   : > { %799 = vmatprep.mubr.f32.mxu0 %v1515_v38  ;;  %960 = vmatprep.mubr.f32.mxu1 %v1515_v38 }
 0x123   : > { %1293 = vmatmul.mubr.msk.f32.gmra.mxu0 %vm201_vm0, %v1762_v14  ;;  %1311 = vmatmul.mubr.msk.f32.gmra.mxu1 %vm201_vm0, %v1762_v14 }
 0x124   : > { %805 = vmatprep.mubr.f32.mxu0 %v1515_v38  ;;  %966 = vmatprep.mubr.f32.mxu1 %v1515_v38 }
 0x127   : > { %1294 = vmatmul.mubr.msk.f32.gmra.mxu0 %vm201_vm0, %v1771_v18  ;;  %1312 = vmatmul.mubr.msk.f32.gmra.mxu1 %vm201_vm0, %v1771_v18 }
 0x128   : > { %811 = vmatprep.mubr.f32.mxu0 %v1515_v38  ;;  %972 = vmatprep.mubr.f32.mxu1 %v1515_v38 }
 0x12b   : > { %1295 = vmatmul.mubr.msk.f32.gmra.mxu0 %vm201_vm0, %v1780_v22  ;;  %1313 = vmatmul.mubr.msk.f32.gmra.mxu1 %vm201_vm0, %v1780_v22 }
 0x12c   : > { %817 = vmatprep.mubr.f32.mxu0 %v1515_v38  ;;  %978 = vmatprep.mubr.f32.mxu1 %v1515_v38 }
 0x12f   : > { %1296 = vmatmul.mubr.msk.f32.gmra.mxu0 %vm201_vm0, %v1789_v24  ;;  %1314 = vmatmul.mubr.msk.f32.gmra.mxu1 %vm201_vm0, %v1789_v24 }
 0x130   : > { %823 = vmatprep.mubr.f32.mxu0 %v1515_v38  ;;  %984 = vmatprep.mubr.f32.mxu1 %v1515_v38 }
 0x133   : > { %1297 = vmatmul.mubr.msk.f32.gmra.mxu0 %vm201_vm0, %v1798_v26  ;;  %1315 = vmatmul.mubr.msk.f32.gmra.mxu1 %vm201_vm0, %v1798_v26 }
 0x134   : > { %829 = vmatprep.mubr.f32.mxu0 %v1515_v38  ;;  %990 = vmatprep.mubr.f32.mxu1 %v1515_v38 }
 0x137   : > { %1298 = vmatmul.mubr.msk.f32.gmra.mxu0 %vm201_vm0, %v1807_v20  ;;  %1316 = vmatmul.mubr.msk.f32.gmra.mxu1 %vm201_vm0, %v1807_v20 }
 0x138   : > { %835 = vmatprep.mubr.f32.mxu0 %v1515_v38  ;;  %996 = vmatprep.mubr.f32.mxu1 %v1515_v38 }
 0x13b   : > { %1299 = vmatmul.mubr.msk.f32.gmra.mxu0 %vm201_vm0, %v1816_v21  ;;  %1317 = vmatmul.mubr.msk.f32.gmra.mxu1 %vm201_vm0, %v1816_v21 }
 0x13c   : > { %841 = vmatprep.mubr.f32.mxu0 %v1515_v38  ;;  %1002 = vmatprep.mubr.f32.mxu1 %v1515_v38 }
 0x13f   : > { %1300 = vmatmul.mubr.msk.f32.gmra.mxu0 %vm201_vm0, %v1825_v30  ;;  %1318 = vmatmul.mubr.msk.f32.gmra.mxu1 %vm201_vm0, %v1825_v30 }
 0x140   : > { %847 = vmatprep.mubr.f32.mxu0 %v1515_v38  ;;  %1008 = vmatprep.mubr.f32.mxu1 %v1515_v38 }
 0x143   : > { %1301 = vmatmul.mubr.msk.f32.gmra.mxu0 %vm201_vm0, %v1834_v32  ;;  %1319 = vmatmul.mubr.msk.f32.gmra.mxu1 %vm201_vm0, %v1834_v32 }
 0x187   : > { %v437_v33 = vpop.f32.mrf.mxu0  ;;  %v598_v34 = vpop.f32.mrf.mxu1 }
 0x188   : > { %1015 = vst [vmem:[%s1941_s14] sm:$0xff] %v437_v33  ;;  %1017 = vst [vmem:[%s1941_s14 + $0x10] sm:$0xff] %v598_v34 }
 0x189   : > { %v439_v35 = vpop.f32.mrf.mxu0  ;;  %v600_v36 = vpop.f32.mrf.mxu1 }
 0x18a   : > { %1016 = vst [vmem:[%s1941_s14 + $0x8] sm:$0xff] %v439_v35  ;;  %1018 = vst [vmem:[%s1941_s14 + $0x18] sm:$0xff] %v600_v36 }
 0x18b   : > { %v443_v37 = vpop.f32.mrf.mxu0  ;;  %v604_v38 = vpop.f32.mrf.mxu1 }
 0x18c   : > { %1023 = vst [vmem:[%s1941_s14 + $0x40] sm:$0xff] %v443_v37  ;;  %1025 = vst [vmem:[%s1941_s14 + $0x50] sm:$0xff] %v604_v38 }
 0x18d   : > { %v445_v39 = vpop.f32.mrf.mxu0  ;;  %v606_v40 = vpop.f32.mrf.mxu1 }
 0x18e   : > { %1024 = vst [vmem:[%s1941_s14 + $0x48] sm:$0xff] %v445_v39  ;;  %1026 = vst [vmem:[%s1941_s14 + $0x58] sm:$0xff] %v606_v40 }
 0x18f   : > { %v449_v41 = vpop.f32.mrf.mxu0  ;;  %v610_v42 = vpop.f32.mrf.mxu1 }
 0x190   : > { %1031 = vst [vmem:[%s1941_s14 + $0x80] sm:$0xff] %v449_v41  ;;  %1033 = vst [vmem:[%s1941_s14 + $0x90] sm:$0xff] %v610_v42 }
 0x191   : > { %v451_v43 = vpop.f32.mrf.mxu0  ;;  %v612_v44 = vpop.f32.mrf.mxu1 }
 0x192   : > { %1032 = vst [vmem:[%s1941_s14 + $0x88] sm:$0xff] %v451_v43  ;;  %1034 = vst [vmem:[%s1941_s14 + $0x98] sm:$0xff] %v612_v44 }
 0x193   : > { %v455_v45 = vpop.f32.mrf.mxu0  ;;  %v616_v46 = vpop.f32.mrf.mxu1 }
 0x194   : > { %1039 = vst [vmem:[%s1941_s14 + $0xc0] sm:$0xff] %v455_v45  ;;  %1041 = vst [vmem:[%s1941_s14 + $0xd0] sm:$0xff] %v616_v46 }
 0x195   : > { %v457_v47 = vpop.f32.mrf.mxu0  ;;  %v618_v48 = vpop.f32.mrf.mxu1 }
 0x196   : > { %1040 = vst [vmem:[%s1941_s14 + $0xc8] sm:$0xff] %v457_v47  ;;  %1042 = vst [vmem:[%s1941_s14 + $0xd8] sm:$0xff] %v618_v48 }
 0x197   : > { %v461_v49 = vpop.f32.mrf.mxu0  ;;  %v622_v50 = vpop.f32.mrf.mxu1 }
 0x198   : > { %1047 = vst [vmem:[%s1941_s14 + $0x100] sm:$0xff] %v461_v49  ;;  %1049 = vst [vmem:[%s1941_s14 + $0x110] sm:$0xff] %v622_v50 }
 0x199   : > { %v463_v51 = vpop.f32.mrf.mxu0  ;;  %v624_v52 = vpop.f32.mrf.mxu1 }
 0x19a   : > { %1048 = vst [vmem:[%s1941_s14 + $0x108] sm:$0xff] %v463_v51  ;;  %1050 = vst [vmem:[%s1941_s14 + $0x118] sm:$0xff] %v624_v52 }
 0x19b   : > { %v467_v53 = vpop.f32.mrf.mxu0  ;;  %v628_v54 = vpop.f32.mrf.mxu1 }
 0x19c   : > { %1055 = vst [vmem:[%s1941_s14 + $0x140] sm:$0xff] %v467_v53  ;;  %1057 = vst [vmem:[%s1941_s14 + $0x150] sm:$0xff] %v628_v54 }
 0x19d   : > { %v469_v55 = vpop.f32.mrf.mxu0  ;;  %v630_v56 = vpop.f32.mrf.mxu1 }
 0x19e   : > { %1056 = vst [vmem:[%s1941_s14 + $0x148] sm:$0xff] %v469_v55  ;;  %1058 = vst [vmem:[%s1941_s14 + $0x158] sm:$0xff] %v630_v56 }
 0x19f   : > { %v473_v57 = vpop.f32.mrf.mxu0  ;;  %v634_v58 = vpop.f32.mrf.mxu1 }
 0x1a0   : > { %1063 = vst [vmem:[%s1941_s14 + $0x180] sm:$0xff] %v473_v57  ;;  %1065 = vst [vmem:[%s1941_s14 + $0x190] sm:$0xff] %v634_v58 }
 0x1a1   : > { %v475_v59 = vpop.f32.mrf.mxu0  ;;  %v636_v60 = vpop.f32.mrf.mxu1 }
 0x1a2   : > { %1064 = vst [vmem:[%s1941_s14 + $0x188] sm:$0xff] %v475_v59  ;;  %1066 = vst [vmem:[%s1941_s14 + $0x198] sm:$0xff] %v636_v60 }
 0x1a3   : > { %v479_v61 = vpop.f32.mrf.mxu0  ;;  %v640_v62 = vpop.f32.mrf.mxu1 }
 0x1a4   : > { %1071 = vst [vmem:[%s1941_s14 + $0x1c0] sm:$0xff] %v479_v61  ;;  %1073 = vst [vmem:[%s1941_s14 + $0x1d0] sm:$0xff] %v640_v62 }
 0x1a5   : > { %v481_v63 = vpop.f32.mrf.mxu0  ;;  %v642_v0 = vpop.f32.mrf.mxu1 }
 0x1a6   : > { %1072 = vst [vmem:[%s1941_s14 + $0x1c8] sm:$0xff] %v481_v63  ;;  %1074 = vst [vmem:[%s1941_s14 + $0x1d8] sm:$0xff] %v642_v0 }
 0x1a7   : > { %v485_v1 = vpop.f32.mrf.mxu0  ;;  %v646_v2 = vpop.f32.mrf.mxu1 }
 0x1a8   : > { %1079 = vst [vmem:[%s1941_s14 + $0x200] sm:$0xff] %v485_v1  ;;  %1081 = vst [vmem:[%s1941_s14 + $0x210] sm:$0xff] %v646_v2 }
 0x1a9   : > { %v487_v3 = vpop.f32.mrf.mxu0  ;;  %v648_v4 = vpop.f32.mrf.mxu1 }
 0x1aa   : > { %1080 = vst [vmem:[%s1941_s14 + $0x208] sm:$0xff] %v487_v3  ;;  %1082 = vst [vmem:[%s1941_s14 + $0x218] sm:$0xff] %v648_v4 }
 0x1ab   : > { %v491_v5 = vpop.f32.mrf.mxu0  ;;  %v652_v6 = vpop.f32.mrf.mxu1 }
 0x1ac   : > { %1087 = vst [vmem:[%s1941_s14 + $0x240] sm:$0xff] %v491_v5  ;;  %1089 = vst [vmem:[%s1941_s14 + $0x250] sm:$0xff] %v652_v6 }
 0x1ad   : > { %v493_v7 = vpop.f32.mrf.mxu0  ;;  %v654_v8 = vpop.f32.mrf.mxu1 }
 0x1ae   : > { %1088 = vst [vmem:[%s1941_s14 + $0x248] sm:$0xff] %v493_v7  ;;  %1090 = vst [vmem:[%s1941_s14 + $0x258] sm:$0xff] %v654_v8 }
 0x1af   : > { %v497_v10 = vpop.f32.mrf.mxu0  ;;  %v658_v11 = vpop.f32.mrf.mxu1 }
 0x1b0   : > { %1095 = vst [vmem:[%s1941_s14 + $0x280] sm:$0xff] %v497_v10  ;;  %1097 = vst [vmem:[%s1941_s14 + $0x290] sm:$0xff] %v658_v11 }
 0x1b1   : > { %v499_v9 = vpop.f32.mrf.mxu0  ;;  %v660_v14 = vpop.f32.mrf.mxu1 }
 0x1b2   : > { %1096 = vst [vmem:[%s1941_s14 + $0x288] sm:$0xff] %v499_v9  ;;  %1098 = vst [vmem:[%s1941_s14 + $0x298] sm:$0xff] %v660_v14 }
 0x1b3   : > { %v503_v15 = vpop.f32.mrf.mxu0  ;;  %v664_v12 = vpop.f32.mrf.mxu1 }
 0x1b4   : > { %1103 = vst [vmem:[%s1941_s14 + $0x2c0] sm:$0xff] %v503_v15  ;;  %1105 = vst [vmem:[%s1941_s14 + $0x2d0] sm:$0xff] %v664_v12 }
 0x1b5   : > { %v505_v18 = vpop.f32.mrf.mxu0  ;;  %v666_v19 = vpop.f32.mrf.mxu1 }
 0x1b6   : > { %1104 = vst [vmem:[%s1941_s14 + $0x2c8] sm:$0xff] %v505_v18  ;;  %1106 = vst [vmem:[%s1941_s14 + $0x2d8] sm:$0xff] %v666_v19 }
 0x1b7   : > { %v509_v13 = vpop.f32.mrf.mxu0  ;;  %v670_v22 = vpop.f32.mrf.mxu1 }
 0x1b8   : > { %1111 = vst [vmem:[%s1941_s14 + $0x300] sm:$0xff] %v509_v13  ;;  %1113 = vst [vmem:[%s1941_s14 + $0x310] sm:$0xff] %v670_v22 }
 0x1b9   : > { %v511_v23 = vpop.f32.mrf.mxu0  ;;  %v672_v16 = vpop.f32.mrf.mxu1 }
 0x1ba   : > { %1112 = vst [vmem:[%s1941_s14 + $0x308] sm:$0xff] %v511_v23  ;;  %1114 = vst [vmem:[%s1941_s14 + $0x318] sm:$0xff] %v672_v16 }
 0x1bb   : > { %v515_v24 = vpop.f32.mrf.mxu0  ;;  %v676_v25 = vpop.f32.mrf.mxu1 }
 0x1bc   : > { %1119 = vst [vmem:[%s1941_s14 + $0x340] sm:$0xff] %v515_v24  ;;  %1121 = vst [vmem:[%s1941_s14 + $0x350] sm:$0xff] %v676_v25 }
 0x1bd   : > { %v517_v17 = vpop.f32.mrf.mxu0  ;;  %v678_v26 = vpop.f32.mrf.mxu1 }
 0x1be   : > { %1120 = vst [vmem:[%s1941_s14 + $0x348] sm:$0xff] %v517_v17  ;;  %1122 = vst [vmem:[%s1941_s14 + $0x358] sm:$0xff] %v678_v26 }
 0x1bf   : > { %v521_v27 = vpop.f32.mrf.mxu0  ;;  %v682_v20 = vpop.f32.mrf.mxu1 }
 0x1c0   : > { %1127 = vst [vmem:[%s1941_s14 + $0x380] sm:$0xff] %v521_v27  ;;  %1129 = vst [vmem:[%s1941_s14 + $0x390] sm:$0xff] %v682_v20 }
 0x1c1   : > { %v523_v28 = vpop.f32.mrf.mxu0  ;;  %v684_v21 = vpop.f32.mrf.mxu1 }
 0x1c2   : > { %1128 = vst [vmem:[%s1941_s14 + $0x388] sm:$0xff] %v523_v28  ;;  %1130 = vst [vmem:[%s1941_s14 + $0x398] sm:$0xff] %v684_v21 }
 0x1c3   : > { %v527_v29 = vpop.f32.mrf.mxu0  ;;  %v688_v30 = vpop.f32.mrf.mxu1 }
 0x1c4   : > { %1135 = vst [vmem:[%s1941_s14 + $0x3c0] sm:$0xff] %v527_v29  ;;  %1137 = vst [vmem:[%s1941_s14 + $0x3d0] sm:$0xff] %v688_v30 }
 0x1c5   : > { %v529_v31 = vpop.f32.mrf.mxu0  ;;  %v690_v32 = vpop.f32.mrf.mxu1 }
 0x1c6   : > { %1136 = vst [vmem:[%s1941_s14 + $0x3c8] sm:$0xff] %v529_v31  ;;  %1138 = vst [vmem:[%s1941_s14 + $0x3d8] sm:$0xff] %v690_v32 }
 0x1c7   : > { %v759_v33 = vpop.f32.mrf.mxu0  ;;  %v920_v34 = vpop.f32.mrf.mxu1 }
 0x1c8   : > { %1019 = vst [vmem:[%s1941_s14 + $0x20] sm:$0xff] %v759_v33  ;;  %1021 = vst [vmem:[%s1941_s14 + $0x30] sm:$0xff] %v920_v34 }
 0x1c9   : > { %v761_v35 = vpop.f32.mrf.mxu0  ;;  %v922_v36 = vpop.f32.mrf.mxu1 }
 0x1ca   : > { %1020 = vst [vmem:[%s1941_s14 + $0x28] sm:$0xff] %v761_v35  ;;  %1022 = vst [vmem:[%s1941_s14 + $0x38] sm:$0xff] %v922_v36 }
 0x1cb   : > { %v765_v37 = vpop.f32.mrf.mxu0  ;;  %v926_v38 = vpop.f32.mrf.mxu1 }
 0x1cc   : > { %1027 = vst [vmem:[%s1941_s14 + $0x60] sm:$0xff] %v765_v37  ;;  %1029 = vst [vmem:[%s1941_s14 + $0x70] sm:$0xff] %v926_v38 }
 0x1cd   : > { %v767_v39 = vpop.f32.mrf.mxu0  ;;  %v928_v40 = vpop.f32.mrf.mxu1 }
 0x1ce   : > { %1028 = vst [vmem:[%s1941_s14 + $0x68] sm:$0xff] %v767_v39  ;;  %1030 = vst [vmem:[%s1941_s14 + $0x78] sm:$0xff] %v928_v40 }
 0x1cf   : > { %v771_v41 = vpop.f32.mrf.mxu0  ;;  %v932_v42 = vpop.f32.mrf.mxu1 }
 0x1d0   : > { %1035 = vst [vmem:[%s1941_s14 + $0xa0] sm:$0xff] %v771_v41  ;;  %1037 = vst [vmem:[%s1941_s14 + $0xb0] sm:$0xff] %v932_v42 }
 0x1d1   : > { %v773_v43 = vpop.f32.mrf.mxu0  ;;  %v934_v44 = vpop.f32.mrf.mxu1 }
 0x1d2   : > { %1036 = vst [vmem:[%s1941_s14 + $0xa8] sm:$0xff] %v773_v43  ;;  %1038 = vst [vmem:[%s1941_s14 + $0xb8] sm:$0xff] %v934_v44 }
 0x1d3   : > { %v777_v45 = vpop.f32.mrf.mxu0  ;;  %v938_v46 = vpop.f32.mrf.mxu1 }
 0x1d4   : > { %1043 = vst [vmem:[%s1941_s14 + $0xe0] sm:$0xff] %v777_v45  ;;  %1045 = vst [vmem:[%s1941_s14 + $0xf0] sm:$0xff] %v938_v46 }
 0x1d5   : > { %v779_v47 = vpop.f32.mrf.mxu0  ;;  %v940_v48 = vpop.f32.mrf.mxu1 }
 0x1d6   : > { %1044 = vst [vmem:[%s1941_s14 + $0xe8] sm:$0xff] %v779_v47  ;;  %1046 = vst [vmem:[%s1941_s14 + $0xf8] sm:$0xff] %v940_v48 }
 0x1d7   : > { %v783_v49 = vpop.f32.mrf.mxu0  ;;  %v944_v50 = vpop.f32.mrf.mxu1 }
 0x1d8   : > { %1051 = vst [vmem:[%s1941_s14 + $0x120] sm:$0xff] %v783_v49  ;;  %1053 = vst [vmem:[%s1941_s14 + $0x130] sm:$0xff] %v944_v50 }
 0x1d9   : > { %v785_v51 = vpop.f32.mrf.mxu0  ;;  %v946_v52 = vpop.f32.mrf.mxu1 }
 0x1da   : > { %1052 = vst [vmem:[%s1941_s14 + $0x128] sm:$0xff] %v785_v51  ;;  %1054 = vst [vmem:[%s1941_s14 + $0x138] sm:$0xff] %v946_v52 }
 0x1db   : > { %v789_v53 = vpop.f32.mrf.mxu0  ;;  %v950_v54 = vpop.f32.mrf.mxu1 }
 0x1dc   : > { %1059 = vst [vmem:[%s1941_s14 + $0x160] sm:$0xff] %v789_v53  ;;  %1061 = vst [vmem:[%s1941_s14 + $0x170] sm:$0xff] %v950_v54 }
 0x1dd   : > { %v791_v55 = vpop.f32.mrf.mxu0  ;;  %v952_v56 = vpop.f32.mrf.mxu1 }
 0x1de   : > { %1060 = vst [vmem:[%s1941_s14 + $0x168] sm:$0xff] %v791_v55  ;;  %1062 = vst [vmem:[%s1941_s14 + $0x178] sm:$0xff] %v952_v56 }
 0x1df   : > { %v795_v57 = vpop.f32.mrf.mxu0  ;;  %v956_v58 = vpop.f32.mrf.mxu1 }
 0x1e0   : > { %1067 = vst [vmem:[%s1941_s14 + $0x1a0] sm:$0xff] %v795_v57  ;;  %1069 = vst [vmem:[%s1941_s14 + $0x1b0] sm:$0xff] %v956_v58 }
 0x1e1   : > { %v797_v59 = vpop.f32.mrf.mxu0  ;;  %v958_v60 = vpop.f32.mrf.mxu1 }
 0x1e2   : > { %1068 = vst [vmem:[%s1941_s14 + $0x1a8] sm:$0xff] %v797_v59  ;;  %1070 = vst [vmem:[%s1941_s14 + $0x1b8] sm:$0xff] %v958_v60 }
 0x1e3   : > { %v801_v61 = vpop.f32.mrf.mxu0  ;;  %v962_v62 = vpop.f32.mrf.mxu1 }
 0x1e4   : > { %1075 = vst [vmem:[%s1941_s14 + $0x1e0] sm:$0xff] %v801_v61  ;;  %1077 = vst [vmem:[%s1941_s14 + $0x1f0] sm:$0xff] %v962_v62 }
 0x1e5   : > { %v803_v63 = vpop.f32.mrf.mxu0  ;;  %v964_v0 = vpop.f32.mrf.mxu1 }
 0x1e6   : > { %1076 = vst [vmem:[%s1941_s14 + $0x1e8] sm:$0xff] %v803_v63  ;;  %1078 = vst [vmem:[%s1941_s14 + $0x1f8] sm:$0xff] %v964_v0 }
 0x1e7   : > { %v807_v1 = vpop.f32.mrf.mxu0  ;;  %v968_v2 = vpop.f32.mrf.mxu1 }
 0x1e8   : > { %1083 = vst [vmem:[%s1941_s14 + $0x220] sm:$0xff] %v807_v1  ;;  %1085 = vst [vmem:[%s1941_s14 + $0x230] sm:$0xff] %v968_v2 }
 0x1e9   : > { %v809_v3 = vpop.f32.mrf.mxu0  ;;  %v970_v4 = vpop.f32.mrf.mxu1 }
 0x1ea   : > { %1084 = vst [vmem:[%s1941_s14 + $0x228] sm:$0xff] %v809_v3  ;;  %1086 = vst [vmem:[%s1941_s14 + $0x238] sm:$0xff] %v970_v4 }
 0x1eb   : > { %v813_v5 = vpop.f32.mrf.mxu0  ;;  %v974_v6 = vpop.f32.mrf.mxu1 }
 0x1ec   : > { %1091 = vst [vmem:[%s1941_s14 + $0x260] sm:$0xff] %v813_v5  ;;  %1093 = vst [vmem:[%s1941_s14 + $0x270] sm:$0xff] %v974_v6 }
 0x1ed   : > { %v815_v7 = vpop.f32.mrf.mxu0  ;;  %v976_v8 = vpop.f32.mrf.mxu1 }
 0x1ee   : > { %1092 = vst [vmem:[%s1941_s14 + $0x268] sm:$0xff] %v815_v7  ;;  %1094 = vst [vmem:[%s1941_s14 + $0x278] sm:$0xff] %v976_v8 }
 0x1ef   : > { %v819_v10 = vpop.f32.mrf.mxu0  ;;  %v980_v11 = vpop.f32.mrf.mxu1 }
 0x1f0   : > { %1099 = vst [vmem:[%s1941_s14 + $0x2a0] sm:$0xff] %v819_v10  ;;  %1101 = vst [vmem:[%s1941_s14 + $0x2b0] sm:$0xff] %v980_v11 }
 0x1f1   : > { %v821_v9 = vpop.f32.mrf.mxu0  ;;  %v982_v14 = vpop.f32.mrf.mxu1 }
 0x1f2   : > { %1100 = vst [vmem:[%s1941_s14 + $0x2a8] sm:$0xff] %v821_v9  ;;  %1102 = vst [vmem:[%s1941_s14 + $0x2b8] sm:$0xff] %v982_v14 }
 0x1f3   : > { %v825_v15 = vpop.f32.mrf.mxu0  ;;  %v986_v12 = vpop.f32.mrf.mxu1 }
 0x1f4   : > { %1107 = vst [vmem:[%s1941_s14 + $0x2e0] sm:$0xff] %v825_v15  ;;  %1109 = vst [vmem:[%s1941_s14 + $0x2f0] sm:$0xff] %v986_v12 }
 0x1f5   : > { %v827_v18 = vpop.f32.mrf.mxu0  ;;  %v988_v19 = vpop.f32.mrf.mxu1 }
 0x1f6   : > { %1108 = vst [vmem:[%s1941_s14 + $0x2e8] sm:$0xff] %v827_v18  ;;  %1110 = vst [vmem:[%s1941_s14 + $0x2f8] sm:$0xff] %v988_v19 }
 0x1f7   : > { %v831_v13 = vpop.f32.mrf.mxu0  ;;  %v992_v22 = vpop.f32.mrf.mxu1 }
 0x1f8   : > { %1115 = vst [vmem:[%s1941_s14 + $0x320] sm:$0xff] %v831_v13  ;;  %1117 = vst [vmem:[%s1941_s14 + $0x330] sm:$0xff] %v992_v22 }
 0x1f9   : > { %v833_v23 = vpop.f32.mrf.mxu0  ;;  %v994_v16 = vpop.f32.mrf.mxu1 }
 0x1fa   : > { %1116 = vst [vmem:[%s1941_s14 + $0x328] sm:$0xff] %v833_v23  ;;  %1118 = vst [vmem:[%s1941_s14 + $0x338] sm:$0xff] %v994_v16 }
 0x1fb   : > { %v837_v24 = vpop.f32.mrf.mxu0  ;;  %v998_v25 = vpop.f32.mrf.mxu1 }
 0x1fc   : > { %1123 = vst [vmem:[%s1941_s14 + $0x360] sm:$0xff] %v837_v24  ;;  %1125 = vst [vmem:[%s1941_s14 + $0x370] sm:$0xff] %v998_v25 }
 0x1fd   : > { %v839_v17 = vpop.f32.mrf.mxu0  ;;  %v1000_v26 = vpop.f32.mrf.mxu1 }
 0x1fe   : > { %1124 = vst [vmem:[%s1941_s14 + $0x368] sm:$0xff] %v839_v17  ;;  %1126 = vst [vmem:[%s1941_s14 + $0x378] sm:$0xff] %v1000_v26 }
 0x1ff   : > { %v843_v27 = vpop.f32.mrf.mxu0  ;;  %v1004_v20 = vpop.f32.mrf.mxu1 }
 0x200   : > { %1131 = vst [vmem:[%s1941_s14 + $0x3a0] sm:$0xff] %v843_v27  ;;  %1133 = vst [vmem:[%s1941_s14 + $0x3b0] sm:$0xff] %v1004_v20 }
 0x201   : > { %v845_v28 = vpop.f32.mrf.mxu0  ;;  %v1006_v21 = vpop.f32.mrf.mxu1 }
 0x202   : > { %1132 = vst [vmem:[%s1941_s14 + $0x3a8] sm:$0xff] %v845_v28  ;;  %1134 = vst [vmem:[%s1941_s14 + $0x3b8] sm:$0xff] %v1006_v21  ;;  %1150 = sbr.rel (!%p1572_p5) target bundleno = 546 (0x222), region = 36 }
 0x203   : > { %v849_v29 = vpop.f32.mrf.mxu0  ;;  %v1010_v30 = vpop.f32.mrf.mxu1 }
 0x204   : > { %1139 = vst [vmem:[%s1941_s14 + $0x3e0] sm:$0xff] %v849_v29  ;;  %1141 = vst [vmem:[%s1941_s14 + $0x3f0] sm:$0xff] %v1010_v30 }
 0x205   : > { %v851_v31 = vpop.f32.mrf.mxu0  ;;  %v1012_v32 = vpop.f32.mrf.mxu1 }
 0x206   : > { %1140 = vst [vmem:[%s1941_s14 + $0x3e8] sm:$0xff] %v851_v31  ;;  %1142 = vst [vmem:[%s1941_s14 + $0x3f8] sm:$0xff] %v1012_v32 }
 0x207   : > { %s2145_s17 = smov (!%p1153_p8, %s1152_s17), 16 }
 0x208   : > { %s2078_s21 = sshll.u32 %s2145_s17, 10 }
 0x209   : > { %s1158_s22 = ssub.s32 16384, %s2078_s21 }
 0x20a   : > { %1159 = vsyncadd %s2073_s16, %s1158_s22  ;;  %p1324_p9 = scmp.ne.s32.totalorder %s2078_s21, 0  ;;  %s1333_s23 = sshll.u32 %s1555_s13, 14 }
 0x20b   : > { %s2087_s25 = scalar_lea.hbm %s2135_s2, %s1333_s23  ;;  %s1165_s26 = sshll.u32 %s1941_s14, 4  ;;  %s2090_s26 = int_to_ptr.vmem [resolvable:$true] %s1165_s26 }
 0x20c   : > { %s1446_s27 = scalar_lea.vmem %s2090_s26, %s2078_s21  ;;  %s1516_s28 = smov [#allocation5]  }
 0x20d   : > { %p1447_p5 = scmp.ne.s32.totalorder %s2090_s26, %s1446_s27  ;;  %s1450_s29 = sshll.u32 %s1516_s28, 4  ;;  %s1451_s29 = int_to_ptr.vmem [resolvable:$false] %s1450_s29 }
 0x20e   : > { %s1452_s13 = scalar_lea.vmem %s1451_s29, 32768  ;;  %p1453_p12 = scmp.lt.s32.totalorder %s2090_s26, %s1451_s29 }
 0x20f   : > { %p1448_p10 = pnand %p1447_p5, %p1324_p9  ;;  %p1454_p13 = scmp.lt.s32.totalorder %s1452_s13, %s1446_s27 }
 0x211   : > { %p1449_p11 = pneg %p1448_p10  ;;  %p1455_p0 = por %p1454_p13, %p1453_p12 }
 0x213   : > { %p1456_p1 = pnand %p1455_p0, %p1449_p11 }
 0x215   : > { %1459 = shalt.err (!%p1456_p1)
}
 0x216   : > { %s1460_s30 = scalar_lea.hbm %s2087_s25, %s2078_s21  ;;  %s1464_s5 = scalar_lea.hbm %s2135_s2, 38912 }
 0x217   : > { %p1461_p2 = scmp.ne.s32.totalorder %s2087_s25, %s1460_s30  ;;  %p1465_p7 = scmp.lt.s32.totalorder %s2087_s25, %s2135_s2 }
 0x218   : > { %p1466_p6 = scmp.lt.s32.totalorder %s1464_s5, %s1460_s30 }
 0x219   : > { %p1462_p3 = pnand %p1461_p2, %p1324_p9 }
 0x21a   : > { %p1467_p8 = por %p1466_p6, %p1465_p7 }
 0x21b   : > { %p1463_p4 = pneg %p1462_p3 }
 0x21d   : > { %p1468_p5 = pnand %p1467_p8, %p1463_p4 }
 0x21f   : > { %1471 = shalt.err (!%p1468_p5)
}
 0x220   : > { %s1517_s8 = smov 1024   ;;  %s1518_s14 = smov 64  }
 0x221   : > { %1171 = dma.vmem_to_hbm [thread:$0]  (%p1324_p9), %s2090_s26, %s2078_s21, %s2087_s25, %s2073_s16, %s1517_s8, %s1517_s8, %s1518_s14  }
 0x222 PF: > { %p1349_p10 = scmp.ge.s32.totalorder %s1510_s12, 2  ;;  %s1180_s17 = sand.u32 1, %s1498_s9  }
 0x223   : > { %p2139_p11 = scmp.ne.s32.totalorder %s2137_s20, 0  ;;  %s1181_s22 = scalar_lea.sflag [#allocation4], %s1180_s17 }
 0x225   : > { %p1344_p12 = pnand %p1349_p10, %p2139_p11 }
 0x227   : > { %p1345_p13 = pneg %p1344_p12 }
 0x229   : > { %1493 = dma.done.wait (%p1345_p13), %s1181_s22, 16384  }
 0x22a   : > { %1495 = vsyncadd (%p1345_p13), %s1181_s22, 4294950912  ;;  %p13_p0 = scmp.ge.s32.totalorder %s1559_s15, 5   ;;  %s2140_s9 = smov %s1502_s10 }
 0x22b   : > { %s2141_s10 = smov %s1506_s11  ;;  %s2142_s11 = smov %s1570_s18 }
 0x22c   : > { %s2143_s12 = smov %s1559_s15  ;;  %15 = sbr.rel (!%p13_p0) target bundleno = 4 (0x4), region = 68 }
 0x231   :  { %1186 = vsyncpa [#allocation3], 1 }
 0x232   :  { %1188 = vsyncpa [#allocation3 + $0x1], 1 }
 0x233   :  { %1189 = vsyncpa [#allocation4], 1 }
 0x234   :  { %1191 = vsyncpa [#allocation4 + $0x1], 1 }

</bundles_post_ra>
